<compile_context>
chip_gen: v6e
topology: v6e:2x2x1
jax: 0.10.0
libtpu: 0.0.40
codegen_flags: <defaults>
</compile_context>

<pallas_src>
import functools
import math

import jax
import jax.numpy as jnp
from jax.experimental import pallas as pl
from jax.experimental.pallas import tpu as pltpu


def _round_up(x, m):
    return (x + m - 1) // m * m


def _cdiv(a, b):
    return -(-a // b)


_SQRT_HALF = 1.0 / math.sqrt(2.0)
_GELU_TANH_C = math.sqrt(2.0 / math.pi)


def _intermediate_kernel(x_ref, w_ref, b_ref, o_ref, acc_ref, *, approximate_gelu):
    # x_ref: (tm, tk)  w_ref: (tk, tn)  b_ref: (1, tn)  o_ref: (tm, tn)
    # acc_ref: (tm, tn) f32 scratch, resident across the k (reduction) axis.
    k = pl.program_id(2)

    @pl.when(k == 0)
    def _init():
        acc_ref[...] = jnp.zeros_like(acc_ref)

    acc_ref[...] += jnp.dot(
        x_ref[...], w_ref[...], preferred_element_type=jnp.float32
    )

    @pl.when(k == pl.num_programs(2) - 1)
    def _epilogue():
        y = acc_ref[...] + b_ref[...]  # f32 bias add (broadcast over rows)
        if approximate_gelu:
            # tanh-approx GELU (rides the EUP slot) — parity tradeoff, off by default.
            g = 0.5 * y * (1.0 + jnp.tanh(_GELU_TANH_C * (y + 0.044715 * y * y * y)))
        else:
            # Exact GELU (matches torch.nn.GELU default / HF ACT2FN["gelu"]).
            g = 0.5 * y * (1.0 + jax.lax.erf(y * _SQRT_HALF))
        o_ref[...] = g.astype(o_ref.dtype)


def _tpu_vmem_and_cores():
    """Best-effort hardware query; conservative (v7x-like) fallback."""
    vmem_cap = 64 << 20  # conservative: v7x per-TC VMEM
    num_cores = 1
    try:
        info = pltpu.get_tpu_info()
        vmem_cap = int(info.vmem_capacity_bytes)
        for attr in ("num_cores", "core_count", "num_tensorcores"):
            v = getattr(info, attr, None)
            if v:
                num_cores = int(v)
                break
    except Exception:
        pass
    return vmem_cap, num_cores


def _choose_tiles(M, H, N, in_bytes, out_bytes, vmem_budget, num_cores):
    """Pick (tm, tn, tk) maximizing arithmetic intensity within the VMEM budget."""
    sub = 16 if in_bytes == 2 else 8
    Ma, Ha, Na = _round_up(M, sub), _round_up(H, 128), _round_up(N, 128)

    decode = Ma <= 64           # decode-sized M: pure weight-streaming regime
    wbufs = 3 if decode else 2  # deeper weight pipeline when streaming weights

    tm_ladder = [Ma] if decode else [1024, 512, 256, 128]
    tn_ladder = [2048, 1024, 512, 256, 128]
    tk_ladder = [1024, 512, 256, 128]

    def footprint(tm, tn, tk):
        return (2 * tm * tk * in_bytes          # x double buffer
                + wbufs * tk * tn * in_bytes    # w double/triple buffer
                + 2 * tn * 4                    # bias double buffer (f32)
                + 2 * tm * tn * out_bytes       # out double buffer
                + tm * tn * 4)                  # f32 accumulator scratch

    best_key, best = None, None
    for tm0 in tm_ladder:
        tm = min(tm0, Ma)
        for tn0 in tn_ladder:
            tn = min(tn0, Na)
            for tk0 in tk_ladder:
                tk = min(tk0, Ha)
                if footprint(tm, tn, tk) > vmem_budget:
                    continue
                waste = (_round_up(Ma, tm) * _round_up(Na, tn) * _round_up(Ha, tk)
                         ) / float(Ma * Na * Ha)
                ai = (tm * tn) / float(tm + tn)      # flops/byte proxy
                key = (ai / waste, -waste, tk * tn, tm)
                if best_key is None or key > best_key:
                    best_key, best = key, (tm, tn, tk)
    if best is None:  # pathological tiny budget; minimal legal tiles always fit
        best = (min(Ma, 128), min(Na, 128), min(Ha, 128))
    tm, tn, tk = best

    # Megacore guard (v7x): keep >= 2 parallel output blocks so both TCs get work.
    if num_cores > 1 and _cdiv(Ma, tm) * _cdiv(Na, tn) < 2:
        if Na >= 256 and tn >= 256:
            tn = _round_up(_cdiv(Na, 2), 128)
        elif Ma >= 2 * sub and tm >= 2 * sub:
            tm = _round_up(_cdiv(Ma, 2), sub)

    return tm, tn, tk, decode


def intermediate_forward(hidden_states, weight, bias, *,
                         compute_dtype=jnp.bfloat16,
                         out_dtype=None,
                         approximate_gelu=False,
                         tm=None, tn=None, tk=None,
                         vmem_fraction=0.6):
    """hidden_states: [B, S, H], weight: [H, N], bias: [N] -> [B, S, N]."""
    B, S, H = hidden_states.shape
    N = weight.shape[1]
    M = B * S

    compute_dtype = jnp.dtype(compute_dtype)
    out_dtype = jnp.dtype(out_dtype) if out_dtype is not None else jnp.dtype(
        hidden_states.dtype)
    in_bytes = compute_dtype.itemsize
    out_bytes = out_dtype.itemsize
    sub = 16 if in_bytes == 2 else 8

    vmem_cap, num_cores = _tpu_vmem_and_cores()
    vmem_budget = int(vmem_cap * vmem_fraction)

    atm, atn, atk, decode = _choose_tiles(
        M, H, N, in_bytes, out_bytes, vmem_budget, num_cores)
    tm = atm if tm is None else min(tm, _round_up(M, sub))
    tn = atn if tn is None else min(tn, _round_up(N, 128))
    tk = atk if tk is None else min(tk, _round_up(H, 128))

    Mp, Np, Hp = _round_up(M, tm), _round_up(N, tn), _round_up(H, tk)
    grid = (Mp // tm, Np // tn, Hp // tk)
    gi, gj, gk = grid

    # Deep-buffer the weight stream only when there is actually a k-pipeline.
    use_deep_w = decode and gk >= 2
    wbufs = 3 if use_deep_w else 2

    # Avoid extra HBM passes in the aligned / already-cast case.
    x2d = hidden_states.reshape(M, H)
    if x2d.dtype != compute_dtype:
        x2d = x2d.astype(compute_dtype)
    w = weight if weight.dtype == compute_dtype else weight.astype(compute_dtype)
    b2d = bias.astype(jnp.float32).reshape(1, N)

    if (Mp, Hp) != (M, H):
        x2d = jnp.pad(x2d, ((0, Mp - M), (0, Hp - H)))
    if (Hp, Np) != (H, N):
        w = jnp.pad(w, ((0, Hp - H), (0, Np - N)))
    if Np != N:
        b2d = jnp.pad(b2d, ((0, 0), (0, Np - N)))

    # Explicit VMEM limit: gatekeeper for the larger tiles chosen above.
    footprint_bytes = (2 * tm * tk * in_bytes + wbufs * tk * tn * in_bytes
                       + 2 * tn * 4 + 2 * tm * tn * out_bytes + tm * tn * 4)
    vmem_limit = int(min(vmem_cap * 0.85,
                         max(footprint_bytes + (16 << 20), 32 << 20)))

    # Honest bytes_accessed: x is re-read once per j-block, w once per i-block.
    bytes_accessed = (Mp * Hp * in_bytes * gj
                      + Hp * Np * in_bytes * gi
                      + Np * 4 * gi
                      + Mp * Np * out_bytes)
    cost = pl.CostEstimate(
        flops=2 * Mp * Np * Hp,
        transcendentals=Mp * Np,      # erf/tanh in the epilogue
        bytes_accessed=int(bytes_accessed),
    )

    if use_deep_w:
        w_spec = pl.BlockSpec((tk, tn), lambda i, j, k: (k, j),
                              pipeline_mode=pl.Buffered(3))
    else:
        w_spec = pl.BlockSpec((tk, tn), lambda i, j, k: (k, j))

    kernel = functools.partial(_intermediate_kernel,
                               approximate_gelu=approximate_gelu)

    out2d = pl.pallas_call(
        kernel,
        out_shape=jax.ShapeDtypeStruct((Mp, Np), out_dtype),
        grid=grid,
        in_specs=[
            pl.BlockSpec((tm, tk), lambda i, j, k: (i, k)),   # x tile
            w_spec,                                           # w tile
            pl.BlockSpec((1, tn), lambda i, j, k: (0, j)),    # bias tile
        ],
        out_specs=pl.BlockSpec((tm, tn), lambda i, j, k: (i, j)),
        scratch_shapes=[pltpu.VMEM((tm, tn), jnp.float32)],
        compiler_params=pltpu.CompilerParams(
            dimension_semantics=("parallel", "parallel", "arbitrary"),
            vmem_limit_bytes=vmem_limit,
        ),
        cost_estimate=cost,
    )(x2d, w, b2d)

    if (Mp, Np) != (M, N):
        out2d = out2d[:M, :N]
    return out2d.reshape(B, S, N)


if __name__ == "__main__":
    # Small config consistent with the module: hidden_size=32, intermediate_size=128
    # TODO(synk): ACT2FN string dispatch not replicated; GELU (erf, default) is
    # implemented with an optional tanh-approx variant.
    B, S, H, N = 2, 8, 32, 128

    key = jax.random.PRNGKey(0)
    kx, kw, kb = jax.random.split(key, 3)

    hidden_states = jax.random.normal(kx, (B, S, H), dtype=jnp.float32)
    # nn.Linear(H, N) params (weight [N, H], bias [N]); stored pre-transposed [H, N].
    weight = jax.random.normal(kw, (H, N), dtype=jnp.float32) * (1.0 / math.sqrt(H))
    bias = jax.random.normal(kb, (N,), dtype=jnp.float32) * 0.02

    # Plain-JAX f32 reference (linear + exact erf GELU, same math as the module).
    ref = hidden_states.reshape(-1, H) @ weight + bias
    ref = 0.5 * ref * (1.0 + jax.lax.erf(ref / math.sqrt(2.0)))
    ref = ref.reshape(B, S, N)

    # Exact-parity path: f32 MXU operands, f32 output.
    out_f32 = intermediate_forward(
        hidden_states, weight, bias, compute_dtype=jnp.float32
    )
    jax.block_until_ready(out_f32)
    assert jnp.allclose(out_f32, ref, atol=1e-5, rtol=1e-5)

    # Fast path (recommended on v5e/v6e/v7x): bf16 MXU operands + bf16 output,
    # f32 accumulation and f32 bias+GELU epilogue. Tolerance loosened for bf16.
    out_bf16 = intermediate_forward(
        hidden_states, weight, bias,
        compute_dtype=jnp.bfloat16, out_dtype=jnp.bfloat16,
    )
    jax.block_until_ready(out_bf16)
    assert jnp.allclose(out_bf16.astype(jnp.float32), ref, atol=3e-2, rtol=3e-2)

    print("KERNEL_OK")
</pallas_src>

<mosaic_0001>
module attributes {stable_mosaic.version = 11 : i64} {
  func.func @_intermediate_kernel(%arg0: i32, %arg1: i32, %arg2: i32, %arg3: memref<16x128xf32, #tpu.memory_space<vmem>>, %arg4: memref<128x128xf32, #tpu.memory_space<vmem>>, %arg5: memref<1x128xf32, #tpu.memory_space<vmem>>, %arg6: memref<16x128xf32, #tpu.memory_space<vmem>>, %arg7: memref<16x128xf32, #tpu.memory_space<vmem>>) attributes {dimension_semantics = [#tpu.dimension_semantics<parallel>, #tpu.dimension_semantics<parallel>, #tpu.dimension_semantics<arbitrary>], iteration_bounds = array<i64: 1, 1, 1>, scalar_prefetch = 0 : i64, scratch_operands = 1 : i64, tpu.core_type = #tpu.core_type<tc>, window_params = [{transform_indices = @transform_0, window_bounds = array<i64: 16, 128>}, {transform_indices = @transform_1, window_bounds = array<i64: 128, 128>}, {transform_indices = @transform_2, window_bounds = array<i64: 1, 128>}, {transform_indices = @transform_3, window_bounds = array<i64: 16, 128>}]} {
    %c0_i32 = arith.constant 0 : i32
    %0 = arith.cmpi eq, %arg2, %c0_i32 : i32
    %1 = arith.extui %0 : i1 to i32
    %c0_i32_0 = arith.constant 0 : i32
    %2 = arith.cmpi ne, %1, %c0_i32_0 : i32
    scf.if %2 {
      %cst_10 = arith.constant 0.000000e+00 : f32
      %12 = vector.broadcast %cst_10 : f32 to vector<16x128xf32>
      %c0_11 = arith.constant 0 : index
      %c0_12 = arith.constant 0 : index
      %13 = vector.load %arg7[%c0_11, %c0_12] : memref<16x128xf32, #tpu.memory_space<vmem>>, vector<16x128xf32>
      tpu.vector_store %arg7[%c0_11, %c0_12], %12 {strides = array<i32>} : memref<16x128xf32, #tpu.memory_space<vmem>>, vector<16x128xf32>,
    } else {
    }
    %c0 = arith.constant 0 : index
    %c0_1 = arith.constant 0 : index
    %3 = vector.load %arg7[%c0, %c0_1] : memref<16x128xf32, #tpu.memory_space<vmem>>, vector<16x128xf32>
    %c0_2 = arith.constant 0 : index
    %c0_3 = arith.constant 0 : index
    %4 = vector.load %arg3[%c0_2, %c0_3] : memref<16x128xf32, #tpu.memory_space<vmem>>, vector<16x128xf32>
    %c0_4 = arith.constant 0 : index
    %c0_5 = arith.constant 0 : index
    %5 = vector.load %arg4[%c0_4, %c0_5] : memref<128x128xf32, #tpu.memory_space<vmem>>, vector<128x128xf32>
    %cst = arith.constant dense<0.000000e+00> : vector<16x128xf32>
    %6 = tpu.matmul %4, %5, %cst {dimension_numbers = #tpu.dot_dimension_numbers<[1], [0], [0], [1], [0, 0, 1, 1], [], []>} : vector<16x128xf32>, vector<128x128xf32>, vector<16x128xf32> -> vector<16x128xf32>
    %7 = arith.addf %3, %6 : vector<16x128xf32>
    %c0_6 = arith.constant 0 : index
    %c0_7 = arith.constant 0 : index
    %8 = vector.load %arg7[%c0_6, %c0_7] : memref<16x128xf32, #tpu.memory_space<vmem>>, vector<16x128xf32>
    tpu.vector_store %arg7[%c0_6, %c0_7], %7 {strides = array<i32>} : memref<16x128xf32, #tpu.memory_space<vmem>>, vector<16x128xf32>,
    %c0_i32_8 = arith.constant 0 : i32
    %9 = arith.cmpi eq, %arg2, %c0_i32_8 : i32
    %10 = arith.extui %9 : i1 to i32
    %c0_i32_9 = arith.constant 0 : i32
    %11 = arith.cmpi ne, %10, %c0_i32_9 : i32
    scf.if %11 {
      %c0_10 = arith.constant 0 : index
      %c0_11 = arith.constant 0 : index
      %12 = vector.load %arg7[%c0_10, %c0_11] : memref<16x128xf32, #tpu.memory_space<vmem>>, vector<16x128xf32>
      %c0_12 = arith.constant 0 : index
      %c0_13 = arith.constant 0 : index
      %13 = vector.load %arg5[%c0_12, %c0_13] : memref<1x128xf32, #tpu.memory_space<vmem>>, vector<1x128xf32>
      %14 = vector.broadcast %13 : vector<1x128xf32> to vector<16x128xf32>
      %15 = arith.addf %12, %14 : vector<16x128xf32>
      %cst_14 = arith.constant 5.000000e-01 : f32
      %16 = vector.broadcast %cst_14 : f32 to vector<16x128xf32>
      %17 = arith.mulf %16, %15 : vector<16x128xf32>
      %cst_15 = arith.constant 0.707106769 : f32
      %18 = vector.broadcast %cst_15 : f32 to vector<16x128xf32>
      %19 = arith.mulf %15, %18 : vector<16x128xf32>
      %20 = math.erf %19 : vector<16x128xf32>
      %cst_16 = arith.constant 1.000000e+00 : f32
      %21 = vector.broadcast %cst_16 : f32 to vector<16x128xf32>
      %22 = arith.addf %21, %20 : vector<16x128xf32>
      %23 = arith.mulf %17, %22 : vector<16x128xf32>
      %c0_17 = arith.constant 0 : index
      %c0_18 = arith.constant 0 : index
      %24 = vector.load %arg6[%c0_17, %c0_18] : memref<16x128xf32, #tpu.memory_space<vmem>>, vector<16x128xf32>
      tpu.vector_store %arg6[%c0_17, %c0_18], %23 {strides = array<i32>} : memref<16x128xf32, #tpu.memory_space<vmem>>, vector<16x128xf32>,
    } else {
    }
    return
  }
  func.func @transform_0(%arg0: i32, %arg1: i32, %arg2: i32) -> (i32, i32) {
    %c0_i32 = arith.constant 0 : i32
    return %arg0, %arg2 : i32, i32
  }
  func.func @transform_1(%arg0: i32, %arg1: i32, %arg2: i32) -> (i32, i32) {
    %c0_i32 = arith.constant 0 : i32
    return %arg2, %arg1 : i32, i32
  }
  func.func @transform_2(%arg0: i32, %arg1: i32, %arg2: i32) -> (i32, i32) {
    %c0_i32 = arith.constant 0 : i32
    %c0_i32_0 = arith.constant 0 : i32
    return %c0_i32, %arg1 : i32, i32
  }
  func.func @transform_3(%arg0: i32, %arg1: i32, %arg2: i32) -> (i32, i32) {
    %c0_i32 = arith.constant 0 : i32
    return %arg0, %arg1 : i32, i32
  }
}

</mosaic_0001>

<bundles_post_ra>
// kernel: tpu_custom_call.1
= control target key start
LH: loop header
LB: loop body
LE: loop exit
PB: predicated region body
PF: predicated region fallthrough
CT: control target
= control target key end

     0   :  { %8 = vsyncpa [#allocation4], 0  ;;  %s367_s0 = inlined_call_operand.hbm [shape: f32[16,128], index: 0, kind: input, shape index: {}]   ;;  %s368_s1 = inlined_call_operand.hbm [shape: f32[128,128], index: 1, kind: input, shape index: {}]   ;;  %s369_s2 = inlined_call_operand.vmem [shape: f32[1,128], index: 2, kind: input, shape index: {}]   ;;  %s370_s3 = inlined_call_operand.hbm [shape: f32[16,128], index: 3, kind: output, shape index: {}]  }
   0x1   :  { %9 = vsyncpa [#allocation7], 0 }
   0x2   :  { %10 = vsyncpa [#allocation5], 0  ;;  %s321_s12 = smov [#allocation3]  }
   0x3   :  { %s16_s13 = sshll.u32 %s321_s12, 4  ;;  %s17_s13 = int_to_ptr.vmem [resolvable:$true] %s16_s13 }
   0x4   :  { %s263_s14 = scalar_lea.vmem %s17_s13, 256  ;;  %p268_p1 = scmp.lt.s32.totalorder %s17_s13, %s17_s13 }
   0x5   :  { %p264_p0 = scmp.ne.s32.totalorder %s17_s13, %s263_s14  ;;  %p269_p2 = scmp.lt.s32.totalorder %s263_s14, %s263_s14 }
   0x7   :  { %p270_p3 = por %p269_p2, %p268_p1 }
   0x9   :  { %p271_p4 = pnand %p270_p3, %p264_p0 }
   0xb   :  { %274 = shalt.err (!%p271_p4)
}
   0xc   :  { %s322_s15 = smov 128   ;;  %s323_s16 = smov 8  }
   0xd   :  { %22 = dma.hbm_to_vmem [thread:$0]  %s367_s0, 256, %s17_s13, [#allocation4], %s322_s15, %s322_s15, %s323_s16  }
   0xe   :  { %s324_s19 = smov [#allocation6]  }
   0xf   :  { %s28_s20 = sshll.u32 %s324_s19, 4  ;;  %s29_s20 = int_to_ptr.vmem [resolvable:$true] %s28_s20 }
  0x10   :  { %s283_s21 = scalar_lea.vmem %s29_s20, 2048  ;;  %p288_p6 = scmp.lt.s32.totalorder %s29_s20, %s29_s20 }
  0x11   :  { %p284_p5 = scmp.ne.s32.totalorder %s29_s20, %s283_s21  ;;  %p289_p7 = scmp.lt.s32.totalorder %s283_s21, %s283_s21 }
  0x13   :  { %p290_p8 = por %p289_p7, %p288_p6 }
  0x15   :  { %p291_p9 = pnand %p290_p8, %p284_p5 }
  0x17   :  { %294 = shalt.err (!%p291_p9)
}
  0x18   :  { %34 = dma.hbm_to_vmem [thread:$0]  %s368_s1, 2048, %s29_s20, [#allocation7], %s322_s15, %s322_s15, %s323_s16  }
  0x19   :  { %315 = dma.done.wait [#allocation4], 256  }
  0x1a   :  { %316 = vsyncadd [#allocation4], 4294967040 }
  0x1b   :  { %317 = dma.done.wait [#allocation7], 2048  }
  0x1c   :  { %318 = vsyncadd [#allocation7], 4294965248  ;;  %v68_v0 = vld [vmem:[#allocation6 + $0x78] sm:$0xff]  ;;  %v67_v1 = vld [vmem:[#allocation6 + $0x70] sm:$0xff]  ;;  %s325_s24 = smov [#allocation8]  }
  0x1d   :  { %211 = vmatprep.subr.mxu0 %v68_v0  ;;  %v66_v2 = vld [vmem:[#allocation6 + $0x68] sm:$0xff]  ;;  %v65_v3 = vld [vmem:[#allocation6 + $0x60] sm:$0xff]  ;;  %v51_v4 = vld [vmem:[#allocation3] sm:$0xff]  ;;  %s179_s25 = sshll.u32 %s325_s24, 4  ;;  %s180_s25 = int_to_ptr.vmem [resolvable:$true] %s179_s25 }
  0x1e   :  { %212 = vmatpush3.msra.mxu0 %v68_v0  ;;  %v64_v5 = vld [vmem:[#allocation6 + $0x58] sm:$0xff]  ;;  %243 = vmatprep.mubr.f32.mxu0 %v51_v4  ;;  %v63_v6 = vld [vmem:[#allocation6 + $0x50] sm:$0xff]  ;;  %v62_v7 = vld [vmem:[#allocation6 + $0x48] sm:$0xff]  ;;  %p300_p11 = scmp.lt.s32.totalorder %s180_s25, %s180_s25 }
  0x1f   :  { %213 = vmatprep.subr.mxu0 %v67_v1  ;;  %v61_v8 = vld [vmem:[#allocation6 + $0x40] sm:$0xff]  ;;  %v60_v9 = vld [vmem:[#allocation6 + $0x38] sm:$0xff]  ;;  %v59_v10 = vld [vmem:[#allocation6 + $0x30] sm:$0xff] }
  0x20   :  { %214 = vmatpush3.msra.mxu0 %v67_v1  ;;  %v58_v11 = vld [vmem:[#allocation6 + $0x28] sm:$0xff]  ;;  %v57_v12 = vld [vmem:[#allocation6 + $0x20] sm:$0xff]  ;;  %v56_v13 = vld [vmem:[#allocation6 + $0x18] sm:$0xff] }
  0x21   :  { %215 = vmatprep.subr.mxu0 %v66_v2  ;;  %v55_v14 = vld [vmem:[#allocation6 + $0x10] sm:$0xff]  ;;  %v54_v15 = vld [vmem:[#allocation6 + $0x8] sm:$0xff]  ;;  %v53_v16 = vld [vmem:[#allocation6] sm:$0xff] }
  0x22   :  { %216 = vmatpush3.msra.mxu0 %v66_v2  ;;  %v52_v17 = vld [vmem:[#allocation3 + $0x8] sm:$0xff]  ;;  %v192_v18 = vld [vmem:[%s369_s2] ss:$0 sm:$0xff]  ;;  %s295_s2 = scalar_lea.vmem %s180_s25, 256 }
  0x23   :  { %217 = vmatprep.subr.mxu0 %v65_v3  ;;  %p296_p10 = scmp.ne.s32.totalorder %s180_s25, %s295_s2  ;;  %p301_p12 = scmp.lt.s32.totalorder %s295_s2, %s295_s2 }
  0x24   :  { %218 = vmatpush3.msra.mxu0 %v65_v3 }
  0x25   :  { %219 = vmatprep.subr.mxu0 %v64_v5  ;;  %p302_p13 = por %p301_p12, %p300_p11 }
  0x26   :  { %220 = vmatpush3.msra.mxu0 %v64_v5 }
  0x27   :  { %221 = vmatprep.subr.mxu0 %v63_v6  ;;  %p303_p0 = pnand %p302_p13, %p296_p10 }
  0x28   :  { %222 = vmatpush3.msra.mxu0 %v63_v6 }
  0x29   :  { %223 = vmatprep.subr.mxu0 %v62_v7 }
  0x2a   :  { %224 = vmatpush3.msra.mxu0 %v62_v7 }
  0x2b   :  { %225 = vmatprep.subr.mxu0 %v61_v8 }
  0x2c   :  { %226 = vmatpush3.msra.mxu0 %v61_v8 }
  0x2d   :  { %227 = vmatprep.subr.mxu0 %v60_v9 }
  0x2e   :  { %228 = vmatpush3.msra.mxu0 %v60_v9 }
  0x2f   :  { %229 = vmatprep.subr.mxu0 %v59_v10 }
  0x30   :  { %230 = vmatpush3.msra.mxu0 %v59_v10 }
  0x31   :  { %231 = vmatprep.subr.mxu0 %v58_v11 }
  0x32   :  { %232 = vmatpush3.msra.mxu0 %v58_v11 }
  0x33   :  { %233 = vmatprep.subr.mxu0 %v57_v12 }
  0x34   :  { %234 = vmatpush3.msra.mxu0 %v57_v12 }
  0x35   :  { %235 = vmatprep.subr.mxu0 %v56_v13 }
  0x36   :  { %236 = vmatpush3.msra.mxu0 %v56_v13 }
  0x37   :  { %237 = vmatprep.subr.mxu0 %v55_v14 }
  0x38   :  { %238 = vmatpush3.msra.mxu0 %v55_v14 }
  0x39   :  { %239 = vmatprep.subr.mxu0 %v54_v15 }
  0x3a   :  { %240 = vmatpush3.msra.mxu0 %v54_v15 }
  0x3b   :  { %241 = vmatprep.subr.mxu0 %v53_v16 }
  0x3c   :  { %242 = vmatpush3.msra.mxu0 %v53_v16 }
  0x3d   :  { %244 = vmatmul.mubr.f32.vlgmr.msra.gmra.mxu0 %v52_v17 }
  0xfd   :  { %v245_v19 = vpop.f32.mrf.mxu0 }
  0xfe   :  { %v161_v20 = vadd.f32 %v245_v19, %v192_v18 }
  0xff   :  { %v135_v21 = vpop.f32.mrf.mxu0 }
 0x100   :  { %v165_v22 = vmul.f32 0.70710677, %v161_v20  ;;  %v160_v23 = vadd.f32 %v192_v18, %v135_v21  ;;  %v163_v26 = vmul.f32 0.5, %v161_v20 }
 0x102   :  { %251 = verf.f32 %v165_v22  ;;  %v164_v24 = vmul.f32 0.70710677, %v160_v23  ;;  %v162_v30 = vmul.f32 0.5, %v160_v23 }
 0x104   :  { %253 = verf.f32 %v164_v24 }
 0x10f   :  { %v252_v25 = vpop.eup %251 }
 0x110   :  { %v169_v27 = vadd.f32 1.0, %v252_v25 }
 0x111   :  { %v254_v28 = vpop.eup %253 }
 0x112   :  { %v171_v29 = vmul.f32 %v169_v27, %v163_v26  ;;  %v168_v31 = vadd.f32 1.0, %v254_v28 }
 0x114   :  { %173 = vst [vmem:[#allocation8 + $0x8] sm:$0xff] %v171_v29  ;;  %v170_v32 = vmul.f32 %v168_v31, %v162_v30 }
 0x116   :  { %172 = vst [vmem:[#allocation8] sm:$0xff] %v170_v32 }
 0x117   :  { %306 = shalt.err (!%p303_p0)
}
 0x118   :  { %185 = dma.vmem_to_hbm [thread:$0]  %s180_s25, 256, %s370_s3, [#allocation5], %s322_s15, %s322_s15, %s323_s16  }
 0x119   :  { %319 = dma.done.wait [#allocation5], 256  }
 0x11a   :  { %320 = vsyncadd [#allocation5], 4294967040 }
 0x11b   :  { %189 = vsyncpa [#allocation4], 1 }
 0x11c   :  { %190 = vsyncpa [#allocation7], 1 }
 0x11d   :  { %191 = vsyncpa [#allocation5], 1 }

</bundles_post_ra>
